<compile_context>
chip_gen: v7x
topology: tpu7x:2x2x1
jax: 0.10.0
libtpu: 0.0.40
codegen_flags: <defaults>
</compile_context>

<pallas_src>
import functools

import jax
import jax.numpy as jnp
from jax.experimental import pallas as pl
from jax.experimental.pallas import tpu as pltpu

LANES = 128
TARGET_BLOCK_BYTES = 1 << 20          # ~1 MiB per tile (per-step overhead amortized)
SMALL_INPUT_ELEMS = 128 * 1024        # below this, fused XLA beats Pallas launch cost


# --------------------------------------------------------------------------- #
# Elementwise math                                                             #
# --------------------------------------------------------------------------- #
def _compute(x, a, b, c, func_type):
    """Elementwise SymbolicTerm.compute() on an already-clamped x (f32)."""
    z = b * x + c
    if func_type == 'sin':
        return a * jnp.sin(z)
    elif func_type == 'cos':
        return a * jnp.cos(z)
    elif func_type == 'tan':
        return a * jnp.tan(z)
    elif func_type == 'csc':
        return a / jnp.sin(z)
    elif func_type == 'sec':
        return a / jnp.cos(z)
    elif func_type == 'cot':
        return a / jnp.tan(z)
    elif func_type == 'arcsin':
        return a * jnp.arcsin(jnp.clip(z, -1 + 1e-3, 1 - 1e-3))
    elif func_type == 'arccos':
        return a * jnp.arccos(jnp.clip(z, -1 + 1e-3, 1 - 1e-3))
    elif func_type == 'arctan':
        return a * jnp.arctan(z)
    elif func_type == 'exp':
        return a * jnp.exp(jnp.minimum(z, 10.0))
    elif func_type == 'log':
        return a * jnp.log(jnp.maximum(z, 1e-3))
    elif func_type == 'poly1':
        return a * x + b
    elif func_type == 'poly2':
        return a * x ** 2 + b * x + c
    elif func_type == 'poly3':
        return a * x ** 3 + b * x ** 2 + c
    else:
        return a * x


def _fold_scale(a, b, c, scale, func_type):
    """Fold a scalar multiplier into the coefficients so that
    scale * compute(x; a, b, c) == compute(x; a', b', c').
    Pure scalar math, done once in setup (no vector pre-scale pass)."""
    if func_type in ('poly1', 'poly2', 'poly3'):
        return a * scale, b * scale, c * scale
    # a * g(b*x + c), a / g(b*x + c), or a * x  ->  only 'a' is scaled.
    return a * scale, b, c


# --------------------------------------------------------------------------- #
# Kernel                                                                       #
# --------------------------------------------------------------------------- #
def _symbolic_term_kernel(params_ref, x_ref, o_ref, *, func_type, has_neighbor,
                          neighbor_func_type):
    # params (SMEM f32): [0]=a_eff [1]=b [2]=c  (+ [3..5] neighbor a/b/c if used)
    a = params_ref[0]
    b = params_ref[1]
    c = params_ref[2]

    x = jnp.clip(x_ref[...].astype(jnp.float32), 1e-6, 1e6)   # safe_input
    out = _compute(x, a, b, c, func_type)                     # route/weight folded in

    if has_neighbor:
        out = out + _compute(x, params_ref[3], params_ref[4], params_ref[5],
                             neighbor_func_type)

    o_ref[...] = out.astype(o_ref.dtype)


# --------------------------------------------------------------------------- #
# Tiling / chip helpers                                                        #
# --------------------------------------------------------------------------- #
_TC_PER_CHIP = None


def _tensorcores_per_chip():
    """2 on v7x (megacore split via ("parallel",)), 1 on v5e/v6e; best effort."""
    global _TC_PER_CHIP
    if _TC_PER_CHIP is None:
        try:
            kind = jax.devices()[0].device_kind.lower()
            _TC_PER_CHIP = 2 if ('v7' in kind or '7x' in kind) else 1
        except Exception:
            _TC_PER_CHIP = 1
    return _TC_PER_CHIP


def _round_up(x, k):
    return ((x + k - 1) // k) * k


def _choose_tiling(rows, sub, target_rows, n_tc):
    """Pick (tm, grid_steps).  Single full-extent block on 1-TC chips when it
    fits; otherwise ~target_rows blocks with the step count rounded to a
    multiple of the TensorCore count for even megacore balance."""
    if rows <= target_rows and (n_tc == 1 or rows <= sub):
        return rows, 1                      # full-dim block (always legal)
    steps = pl.cdiv(rows, target_rows)
    if n_tc > 1:
        steps = max(steps, n_tc)
        if steps % n_tc:
            steps += n_tc - (steps % n_tc)
    tm = _round_up(pl.cdiv(rows, steps), sub)
    return tm, pl.cdiv(rows, tm)


def _blockspec(shape, index_map, buffers):
    """BlockSpec with optional deeper pipelining (falls back if unsupported)."""
    if buffers is not None and hasattr(pl, "Buffered"):
        try:
            return pl.BlockSpec(shape, index_map, pipeline_mode=pl.Buffered(buffers))
        except TypeError:
            pass
    return pl.BlockSpec(shape, index_map)


# --------------------------------------------------------------------------- #
# Fallback (tiny / misaligned / exotic-dtype inputs)                           #
# --------------------------------------------------------------------------- #
def _fallback(x, scalars, func_type, has_neighbor, neighbor_func_type, out_dtype):
    xf = jnp.clip(x.astype(jnp.float32), 1e-6, 1e6)
    out = _compute(xf, scalars[0], scalars[1], scalars[2], func_type)
    if has_neighbor:
        out = out + _compute(xf, scalars[3], scalars[4], scalars[5],
                             neighbor_func_type)
    return out.astype(out_dtype)


# --------------------------------------------------------------------------- #
# Wrapper                                                                      #
# --------------------------------------------------------------------------- #
def symbolic_term_forward(x, params, *, func_type='sin',
                          neighbor_params=None, neighbor_func_type='sin',
                          small_input_threshold=SMALL_INPUT_ELEMS):
    """params: dict with 'a','b','c','weight' (shape (1,)) and 'route' (shape (3,))."""
    orig_shape = x.shape
    orig_dtype = x.dtype
    f32 = jnp.float32

    # -------- scalar setup (plain JAX, trivial cost; keep the whole call jitted) ----
    rw = jax.nn.softmax(params['route'].astype(f32))
    scale = (rw[0] - rw[1]) * params['weight'].astype(f32)[0]
    a_e, b_e, c_e = _fold_scale(params['a'].astype(f32)[0],
                                params['b'].astype(f32)[0],
                                params['c'].astype(f32)[0],
                                scale, func_type)
    scalars = [a_e, b_e, c_e]

    has_neighbor = neighbor_params is not None
    if has_neighbor:
        na, nb, nc = _fold_scale(neighbor_params['a'].astype(f32)[0],
                                 neighbor_params['b'].astype(f32)[0],
                                 neighbor_params['c'].astype(f32)[0],
                                 rw[2], neighbor_func_type)
        scalars += [na, nb, nc]

    n = x.size
    dtype_ok = (orig_dtype == jnp.float32) or (orig_dtype == jnp.bfloat16)
    pallas_ok = (dtype_ok
                 and n >= LANES
                 and n % LANES == 0
                 and n >= small_input_threshold)
    if not pallas_ok:
        # TODO(synk): mask the ragged tail in-kernel instead of the XLA fallback.
        return _fallback(x, scalars, func_type, has_neighbor,
                         neighbor_func_type, orig_dtype).reshape(orig_shape)

    io_dtype = orig_dtype
    sub = 16 if io_dtype == jnp.bfloat16 else 8           # min sublane granularity
    itemsize = 2 if io_dtype == jnp.bfloat16 else 4
    target_rows = TARGET_BLOCK_BYTES // (LANES * itemsize)  # ~1 MiB per tile

    rows = n // LANES
    x2d = jnp.reshape(x, (rows, LANES))                   # metadata-only reshape
    tm, grid_steps = _choose_tiling(rows, sub, target_rows, _tensorcores_per_chip())

    packed = jnp.stack(scalars).astype(f32)               # (3,) or (6,)

    kernel = functools.partial(
        _symbolic_term_kernel,
        func_type=func_type,
        has_neighbor=has_neighbor,
        neighbor_func_type=neighbor_func_type,
    )

    buffers = 3 if grid_steps >= 3 else None              # deeper pipelining on big grids
    x_spec = _blockspec((tm, LANES), lambda i: (i, 0), buffers)
    o_spec = _blockspec((tm, LANES), lambda i: (i, 0), buffers)

    out2d = pl.pallas_call(
        kernel,
        out_shape=jax.ShapeDtypeStruct((rows, LANES), io_dtype),
        grid_spec=pltpu.PrefetchScalarGridSpec(
            num_scalar_prefetch=0,
            grid=(grid_steps,),
            in_specs=[
                # scalars: single untiled SMEM copy (constant block index ->
                # not re-fetched per grid step)
                pl.BlockSpec(memory_space=pltpu.MemorySpace.SMEM),
                x_spec,
            ],
            out_specs=o_spec,
        ),
        compiler_params=pltpu.CompilerParams(
            dimension_semantics=("parallel",),
            vmem_limit_bytes=32 * 1024 * 1024,
        ),
    )(packed, x2d)

    return out2d.reshape(orig_shape)                      # metadata-only reshape


# --------------------------------------------------------------------------- #
# Pure-JAX reference                                                           #
# --------------------------------------------------------------------------- #
def _reference_forward(x, params, func_type='sin',
                       neighbor_params=None, neighbor_func_type='sin'):
    xf = jnp.clip(x.astype(jnp.float32), 1e-6, 1e6)
    value = _compute(xf, params['a'][0], params['b'][0], params['c'][0], func_type)
    rw = jax.nn.softmax(params['route'].astype(jnp.float32))
    w = params['weight'][0]
    out = rw[0] * w * value - rw[1] * w * value
    if neighbor_params is not None:
        out = out + rw[2] * _compute(xf,
                                     neighbor_params['a'][0],
                                     neighbor_params['b'][0],
                                     neighbor_params['c'][0],
                                     neighbor_func_type)
    return out.astype(x.dtype)


# --------------------------------------------------------------------------- #
# Demo / self-test                                                             #
# --------------------------------------------------------------------------- #
if __name__ == "__main__":
    key = jax.random.PRNGKey(0)
    ks = jax.random.split(key, 9)

    # NCHW input, consistent with a conv-style network feeding this term.
    x = jax.random.normal(ks[0], (2, 4, 16, 16), dtype=jnp.float32)

    params = {
        'a': jax.random.normal(ks[1], (1,), dtype=jnp.float32),
        'b': jax.random.normal(ks[2], (1,), dtype=jnp.float32),
        'c': jax.random.normal(ks[3], (1,), dtype=jnp.float32),
        'weight': jax.random.normal(ks[4], (1,), dtype=jnp.float32),
        'route': jax.random.normal(ks[5], (3,), dtype=jnp.float32),
    }
    neighbor = {
        'a': jax.random.normal(ks[6], (1,), dtype=jnp.float32),
        'b': jax.random.normal(ks[7], (1,), dtype=jnp.float32),
        'c': jax.random.normal(ks[8], (1,), dtype=jnp.float32),
    }

    # 1) plain term (neighbor=None); threshold=0 forces the Pallas path so the
    #    kernel is exercised even at this small demo size.
    fwd = jax.jit(functools.partial(symbolic_term_forward, func_type='sin',
                                    small_input_threshold=0))
    out = jax.block_until_ready(fwd(x, params))
    ref = _reference_forward(x, params, 'sin')
    assert out.shape == x.shape and out.dtype == x.dtype
    assert jnp.allclose(out, ref, atol=1e-5, rtol=1e-5), "mismatch (no neighbor)"

    # 2) with a neighbor term (rw[2] * neighbor.compute(x)), 'poly2' neighbor.
    fwd_n = jax.jit(functools.partial(symbolic_term_forward, func_type='sin',
                                      neighbor_func_type='poly2',
                                      small_input_threshold=0))
    out_n = jax.block_until_ready(fwd_n(x, params, neighbor_params=neighbor))
    ref_n = _reference_forward(x, params, 'sin', neighbor, 'poly2')
    assert jnp.allclose(out_n, ref_n, atol=1e-5, rtol=1e-5), "mismatch (neighbor)"

    print("KERNEL_OK")
</pallas_src>

<mosaic_0001>
module attributes {stable_mosaic.version = 11 : i64} {
  func.func @_symbolic_term_kernel(%arg0: i32, %arg1: memref<3xf32, #tpu.memory_space<smem>>, %arg2: memref<16x128xf32, #tpu.memory_space<vmem>>, %arg3: memref<16x128xf32, #tpu.memory_space<vmem>>) attributes {dimension_semantics = [#tpu.dimension_semantics<parallel>], iteration_bounds = array<i64: 1>, scalar_prefetch = 0 : i64, scratch_operands = 0 : i64, tpu.core_type = #tpu.core_type<tc>, window_params = [{transform_indices = @transform_0, window_bounds = array<i64: 3>}, {transform_indices = @transform_1, window_bounds = array<i64: 16, 128>}, {transform_indices = @transform_2, window_bounds = array<i64: 16, 128>}]} {
    %c0 = arith.constant 0 : index
    %0 = memref.load %arg1[%c0] : memref<3xf32, #tpu.memory_space<smem>>
    %c1 = arith.constant 1 : index
    %1 = memref.load %arg1[%c1] : memref<3xf32, #tpu.memory_space<smem>>
    %c2 = arith.constant 2 : index
    %2 = memref.load %arg1[%c2] : memref<3xf32, #tpu.memory_space<smem>>
    %c0_0 = arith.constant 0 : index
    %c0_1 = arith.constant 0 : index
    %3 = vector.load %arg2[%c0_0, %c0_1] : memref<16x128xf32, #tpu.memory_space<vmem>>, vector<16x128xf32>
    %cst = arith.constant 9.99999997E-7 : f32
    %cst_2 = arith.constant 1.000000e+06 : f32
    %4 = vector.broadcast %cst : f32 to vector<16x128xf32>
    %5 = arith.maximumf %4, %3 : vector<16x128xf32>
    %6 = vector.broadcast %cst_2 : f32 to vector<16x128xf32>
    %7 = arith.minimumf %6, %5 : vector<16x128xf32>
    %8 = vector.broadcast %1 : f32 to vector<16x128xf32>
    %9 = arith.mulf %8, %7 : vector<16x128xf32>
    %10 = vector.broadcast %2 : f32 to vector<16x128xf32>
    %11 = arith.addf %9, %10 : vector<16x128xf32>
    %12 = math.sin %11 : vector<16x128xf32>
    %13 = vector.broadcast %0 : f32 to vector<16x128xf32>
    %14 = arith.mulf %13, %12 : vector<16x128xf32>
    %c0_3 = arith.constant 0 : index
    %c0_4 = arith.constant 0 : index
    %15 = vector.load %arg3[%c0_3, %c0_4] : memref<16x128xf32, #tpu.memory_space<vmem>>, vector<16x128xf32>
    tpu.vector_store %arg3[%c0_3, %c0_4], %14 {strides = array<i32>} : memref<16x128xf32, #tpu.memory_space<vmem>>, vector<16x128xf32>,
    return
  }
  func.func @transform_0(%arg0: i32) -> i32 {
    %c0_i32 = arith.constant 0 : i32
    %c0_i32_0 = arith.constant 0 : i32
    return %c0_i32 : i32
  }
  func.func @transform_1(%arg0: i32) -> (i32, i32) {
    %c0_i32 = arith.constant 0 : i32
    %c0_i32_0 = arith.constant 0 : i32
    return %arg0, %c0_i32 : i32, i32
  }
  func.func @transform_2(%arg0: i32) -> (i32, i32) {
    %c0_i32 = arith.constant 0 : i32
    %c0_i32_0 = arith.constant 0 : i32
    return %arg0, %c0_i32 : i32, i32
  }
}

</mosaic_0001>

<bundles_post_ra>
// kernel: symbolic_term_forward.1
= control target key start
LH: loop header
LB: loop body
LE: loop exit
PB: predicated region body
PF: predicated region fallthrough
CT: control target
= control target key end

     0   :  { %7 = vsyncpa [#allocation3], 0  ;;  %s414_s0 = inlined_call_operand.vmem [shape: f32[3], index: 0, kind: input, shape index: {}]   ;;  %s415_s1 = inlined_call_operand.vmem [shape: f32[16,128], index: 1, kind: input, shape index: {}]   ;;  %s416_s2 = inlined_call_operand.vmem [shape: f32[16,128], index: 2, kind: output, shape index: {}]  }
   0x1   :  { %s14_s11 = sshll.u32 %s414_s0, 4  ;;  %s15_s11 = int_to_ptr.vmem [resolvable:$true] %s14_s11 }
   0x2   :  { %s290_s12 = scalar_lea.vmem %s15_s11, 16  ;;  %p295_p1 = scmp.lt.s32.totalorder %s15_s11, %s15_s11 }
   0x3   :  { %p291_p0 = scmp.ne.s32.totalorder %s15_s11, %s290_s12  ;;  %p296_p2 = scmp.lt.s32.totalorder %s290_s12, %s290_s12 }
   0x5   :  { %p297_p3 = por %p296_p2, %p295_p1 }
   0x7   :  { %p298_p4 = pnand %p297_p3, %p291_p0 }
   0x9   :  { %301 = shalt.err (!%p298_p4)
}
   0xa   :  { %s304_s13 = smov [#allocation2]  }
   0xb   :  { %17 = dma.vmem_to_smem %s15_s11, 16, %s304_s13, [#allocation3]  }
   0xc   :  { %302 = dma.done.wait [#allocation3], 16  }
   0xd   :  { %303 = vsyncadd [#allocation3], 4294967280 }
   0xe   :  { %23 = sfence }
   0xf   :  { %s257_s14 = sld [smem:[#allocation2 + $0x1]]  ;;  %v27_v0 = vld [vmem:[%s415_s1] sm:$0xff]  ;;  %v28_v1 = vld [vmem:[%s415_s1 + $0x8] sm:$0xff]  ;;  %s258_s18 = sld [smem:[#allocation2 + $0x2]]  ;;  %v305_v34 = vmov 683565275  }
  0x10   :  { %v29_v2 = vmax.f32 %v27_v0, 1e-06  ;;  %v30_v3 = vmax.f32 %v28_v1, 1e-06  ;;  %v306_v36 = vmov 2475754826  }
  0x11   :  { %v307_v38 = vmov 2131351028   ;;  %v308_v40 = vmov 2102212464   ;;  %v309_v42 = vmov 920167782  }
  0x12   :  { %v31_v4 = vmin.f32 %v29_v2, 1000000.0  ;;  %v32_v5 = vmin.f32 %v30_v3, 1000000.0  ;;  %v310_v50 = vmov 1326507024  }
  0x13   :  { %s402_s1 = sld [smem:[#allocation2]] }
  0x15   :  { %v33_v6 = vstv %s257_s14  ;;  %v36_v9 = vstv %s258_s18 }
  0x16   :  { %v34_v7 = vmul.f32 %v33_v6, %v31_v4  ;;  %v35_v8 = vmul.f32 %v33_v6, %v32_v5 }
  0x18   :  { %v335_v10 = vadd.f32 %v36_v9, %v34_v7  ;;  %v337_v11 = vadd.f32 %v36_v9, %v35_v8 }
  0x1a   :  { %v39_v12 = vand.u32 2147483647, %v335_v10  ;;  %v42_v13 = vand.u32 2139095040, %v335_v10  ;;  %v143_v14 = vand.u32 2147483647, %v337_v11  ;;  %v146_v15 = vand.u32 2139095040, %v337_v11 }
  0x1b   :  { %vm41_vm14 = vcmp.lt.s32.totalorder %v335_v10, 0 }
  0x1c   :  { %v43_v16 = vshrl.u32 %v42_v13, 23  ;;  %v46_v17 = vand.u32 8388607, %v39_v12  ;;  %v147_v18 = vshrl.u32 %v146_v15, 23  ;;  %v150_v19 = vand.u32 8388607, %v143_v14 }
  0x1d   :  { %vm40_vm15 = vcmp.le.f32.partialorder %v39_v12, 0.7853982 }
  0x1e   :  { %v259_v20 = vadd.s32 4294967169, %v43_v16  ;;  %v263_v21 = vadd.s32 4294967169, %v147_v18  ;;  %v47_v23 = vor.u32 8388608, %v46_v17  ;;  %v151_v24 = vor.u32 8388608, %v150_v19 }
  0x20   :  { %v49_v22 = vadd.s32 1, %v259_v20  ;;  %v153_v25 = vadd.s32 1, %v263_v21  ;;  %v347_v30 = vshll.u32 %v47_v23, 8  ;;  %v349_v32 = vshll.u32 %v151_v24, 8 }
  0x22   :  { %vm50_vm0 = vcmp.gt.s32.totalorder %v49_v22, 0  ;;  %vm154_vm1 = vcmp.gt.s32.totalorder %v153_v25, 0 }
  0x23   :  { %v51_v26 = vsel %vm50_vm0, %v49_v22, 0  ;;  %v155_v29 = vsel %vm154_vm1, %v153_v25, 0  ;;  %vm145_vm0 = vcmp.lt.s32.totalorder %v337_v11, 0  ;;  %vm144_vm1 = vcmp.le.f32.partialorder %v143_v14, 0.7853982 }
  0x24   :  { %v52_v27 = vshrl.u32 %v51_v26, 5  ;;  %v53_v28 = vand.u32 31, %v51_v26  ;;  %v157_v31 = vand.u32 31, %v155_v29  ;;  %v351_v44 = vshrl.u32 %v155_v29, 5 }
  0x26   :  { %v54_v33 = vsub.s32 32, %v53_v28  ;;  %v56_v35 = vshll.u32 %v305_v34, %v53_v28  ;;  %v59_v37 = vshll.u32 %v306_v36, %v53_v28  ;;  %v62_v39 = vshll.u32 %v307_v38, %v53_v28 }
  0x27   :  { %v65_v41 = vshll.u32 %v308_v40, %v53_v28  ;;  %v68_v43 = vshll.u32 %v309_v42, %v53_v28  ;;  %vm71_vm2 = vcmp.lt.s32.totalorder %v52_v27, 1  ;;  %vm72_vm3 = vcmp.lt.s32.totalorder %v52_v27, 2 }
  0x28   :  { %v55_v45 = vshrl.u32 %v305_v34, %v54_v33  ;;  %v57_v46 = vshrl.u32 %v306_v36, %v54_v33  ;;  %v60_v47 = vshrl.u32 %v307_v38, %v54_v33  ;;  %v63_v48 = vshrl.u32 %v308_v40, %v54_v33 }
  0x29   :  { %v66_v49 = vshrl.u32 %v309_v42, %v54_v33  ;;  %v69_v51 = vshrl.u32 %v310_v50, %v54_v33  ;;  %vm74_vm4 = vcmp.lt.s32.totalorder %v52_v27, 4  ;;  %v158_v55 = vsub.s32 32, %v157_v31 }
  0x2a   :  { %v58_v52 = vor.u32 %v57_v46, %v56_v35  ;;  %v61_v53 = vor.u32 %v60_v47, %v59_v37  ;;  %v64_v54 = vor.u32 %v63_v48, %v62_v39  ;;  %vm73_vm5 = vcmp.lt.s32.totalorder %v52_v27, 3 }
  0x2b   :  { %v67_v56 = vor.u32 %v66_v49, %v65_v41  ;;  %v70_v57 = vor.u32 %v69_v51, %v68_v43  ;;  %v160_v58 = vshll.u32 %v305_v34, %v157_v31  ;;  %v163_v2 = vshll.u32 %v306_v36, %v157_v31 }
  0x2c   :  { %v75_v59 = vsel %vm71_vm2, %v55_v45, %v58_v52  ;;  %v76_v60 = vsel %vm74_vm4, %v64_v54, 2102212464  ;;  %v79_v61 = vsel %vm71_vm2, %v58_v52, %v61_v53  ;;  %v83_v62 = vsel %vm71_vm2, %v61_v53, %v64_v54 }
  0x2d   :  { %v77_v63 = vsel %vm73_vm5, %v61_v53, %v76_v60  ;;  %v80_v0 = vsel %vm74_vm4, %v67_v56, 920167782  ;;  %v84_v1 = vsel %vm74_vm4, %v70_v57, 1326507024  ;;  %v159_v5 = vshrl.u32 %v305_v34, %v158_v55 }
  0x2e   :  { %v81_v3 = vsel %vm73_vm5, %v64_v54, %v80_v0  ;;  %v85_v4 = vsel %vm73_vm5, %v67_v56, %v84_v1  ;;  %v161_v6 = vshrl.u32 %v306_v36, %v158_v55  ;;  %v78_v7 = vsel %vm72_vm3, %v75_v59, %v77_v63 }
  0x2f   :  { %v82_v8 = vsel %vm72_vm3, %v79_v61, %v81_v3  ;;  %v86_v9 = vsel %vm72_vm3, %v83_v62, %v85_v4  ;;  %v164_v13 = vshrl.u32 %v307_v38, %v158_v55  ;;  %v166_v21 = vshll.u32 %v307_v38, %v157_v31 }
  0x30   :  { %v360_v15 = vmul.u32.u64.low %v347_v30, %v86_v9  ;;  %v361_v16 = vmul.u32.u64.high %v347_v30, %v86_v9, %v360_v15  ;;  %v364_v17 = vmul.u32.u64.low %v347_v30, %v82_v8  ;;  %v365_v18 = vmul.u32.u64.high %v347_v30, %v82_v8, %v364_v17 }
  0x31   :  { %v162_v19 = vor.u32 %v161_v6, %v160_v58  ;;  %v165_v20 = vor.u32 %v164_v13, %v163_v2  ;;  %v167_v22 = vshrl.u32 %v308_v40, %v158_v55  ;;  %v169_v23 = vshll.u32 %v308_v40, %v157_v31 }
  0x32   :  { %v170_v24 = vshrl.u32 %v309_v42, %v158_v55  ;;  %v172_v25 = vshll.u32 %v309_v42, %v157_v31  ;;  %v173_v26 = vshrl.u32 %v310_v50, %v158_v55  ;;  %v94_v27 = vmul.u32 %v347_v30, %v78_v7 }
  0x33   :  { %v168_v28 = vor.u32 %v167_v22, %v166_v21  ;;  %vm175_vm6 = vcmp.lt.s32.totalorder %v351_v44, 1  ;;  %vm176_vm7 = vcmp.lt.s32.totalorder %v351_v44, 2  ;;  %vm96_vm8 = vc.u32 %v361_v16, %v364_v17 }
  0x34   :  { %v97_v29 = vadd.s32 1, %v365_v18  ;;  %v171_v33 = vor.u32 %v170_v24, %v169_v23  ;;  %vm177_vm9 = vcmp.lt.s32.totalorder %v351_v44, 3  ;;  %v174_v34 = vor.u32 %v173_v26, %v172_v25 }
  0x35   :  { %vm178_vm10 = vcmp.lt.s32.totalorder %v351_v44, 4  ;;  %v179_v35 = vsel %vm175_vm6, %v159_v5, %v162_v19  ;;  %v183_v31 = vsel %vm175_vm6, %v162_v19, %v165_v20  ;;  %v187_v38 = vsel %vm175_vm6, %v165_v20, %v168_v28 }
  0x36   :  { %v98_v36 = vsel %vm96_vm8, %v97_v29, %v365_v18  ;;  %v180_v30 = vsel %vm178_vm10, %v168_v28, 2102212464  ;;  %v184_v37 = vsel %vm178_vm10, %v171_v33, 920167782  ;;  %v188_v42 = vsel %vm178_vm10, %v174_v34, 1326507024 }
  0x37   :  { %v99_v39 = vadd.s32 %v98_v36, %v94_v27  ;;  %v181_v40 = vsel %vm177_vm9, %v165_v20, %v180_v30  ;;  %v185_v41 = vsel %vm177_vm9, %v168_v28, %v184_v37  ;;  %v189_v46 = vsel %vm177_vm9, %v171_v33, %v188_v42 }
  0x38   :  { %v182_v43 = vsel %vm176_vm7, %v179_v35, %v181_v40  ;;  %v186_v45 = vsel %vm176_vm7, %v183_v31, %v185_v41  ;;  %v190_v48 = vsel %vm176_vm7, %v187_v38, %v189_v46  ;;  %v95_v3 = vadd.s32 %v364_v17, %v361_v16 }
  0x39   :  { %v100_v47 = vadd.s32 536870912, %v99_v39  ;;  %v382_v49 = vmul.u32.u64.low %v349_v32, %v186_v45  ;;  %v383_v50 = vmul.u32.u64.high %v349_v32, %v186_v45, %v382_v49  ;;  %v198_v54 = vmul.u32 %v349_v32, %v182_v43 }
  0x3a   :  { %v386_v51 = vmul.u32.u64.low %v349_v32, %v190_v48  ;;  %v387_v52 = vmul.u32.u64.high %v349_v32, %v190_v48, %v386_v51  ;;  %vm131_vm5 = vweird.f32 %v335_v10  ;;  %vm235_vm9 = vweird.f32 %v337_v11 }
  0x3b   :  { %v101_v53 = vshrl.u32 %v100_v47, 30  ;;  %v201_v56 = vadd.s32 1, %v383_v50 }
  0x3c   :  { %vm200_vm11 = vc.u32 %v387_v52, %v382_v49  ;;  %v199_v23 = vadd.s32 %v382_v49, %v387_v52 }
  0x3d   :  { %v102_v55 = vshll.u32 %v101_v53, 30  ;;  %v202_v44 = vsel %vm200_vm11, %v201_v56, %v383_v50  ;;  %v125_v16 = vsub.s32 4, %v101_v53 }
  0x3e   :  { %v203_v58 = vadd.s32 %v202_v44, %v198_v54 }
  0x3f   :  { %v103_v57 = vsub.s32 %v99_v39, %v102_v55  ;;  %v126_v35 = vsel %vm41_vm14, %v125_v16, %v101_v53 }
  0x40   :  { %v204_v60 = vadd.s32 536870912, %v203_v58  ;;  %v128_v38 = vsel %vm40_vm15, 0, %v126_v35 }
  0x41   :  { %v105_v59 = vsub.s32 0, %v103_v57  ;;  %v132_v43 = vadd.s32 3, %v128_v38 }
  0x42   :  { %v205_v62 = vshrl.u32 %v204_v60, 30 }
  0x43   :  { %v260_v61 = vmin.u32 %v105_v59, %v103_v57  ;;  %v133_v47 = vand.u32 3, %v132_v43 }
  0x44   :  { %v206_v0 = vshll.u32 %v205_v62, 30  ;;  %v229_v42 = vsub.s32 4, %v205_v62 }
  0x45   :  { %v107_v63 = vclz %v260_v61  ;;  %vm138_vm2 = vcmp.eq.s32.totalorder %v133_v47, 2  ;;  %vm135_vm3 = vcmp.eq.s32.totalorder %v133_v47, 0  ;;  %vm134_vm4 = vcmp.lt.s32.totalorder %v133_v47, 2 }
  0x46   :  { %v207_v2 = vsub.s32 %v203_v58, %v206_v0  ;;  %v230_v46 = vsel %vm145_vm0, %v229_v42, %v205_v62 }
  0x47   :  { %v261_v1 = vadd.s32 4294967294, %v107_v63  ;;  %v232_v50 = vsel %vm144_vm1, 0, %v230_v46 }
  0x48   :  { %v209_v4 = vsub.s32 0, %v207_v2  ;;  %v236_v54 = vadd.s32 3, %v232_v50 }
  0x49   :  { %vm262_vm12 = vcmp.lt.s32.totalorder %v261_v1, 0 }
  0x4a   :  { %v110_v32 = vsel %vm262_vm12, 0, %v261_v1  ;;  %v264_v8 = vmin.u32 %v209_v4, %v207_v2  ;;  %v237_v58 = vand.u32 3, %v236_v54 }
  0x4b   :  { %v111_v5 = vsub.s32 32, %v110_v32  ;;  %v112_v6 = vshll.u32 %v103_v57, %v110_v32  ;;  %v115_v7 = vsub.s32 4294967266, %v110_v32  ;;  %v247_v57 = vstv %s402_s1 }
  0x4c   :  { %v211_v15 = vclz %v264_v8  ;;  %vm242_vm6 = vcmp.eq.s32.totalorder %v237_v58, 2  ;;  %vm239_vm7 = vcmp.eq.s32.totalorder %v237_v58, 0  ;;  %vm238_vm8 = vcmp.lt.s32.totalorder %v237_v58, 2 }
  0x4d   :  { %v113_v9 = vshrl.u32 %v95_v3, %v111_v5  ;;  %v116_v13 = vadd.s32 127, %v115_v7 }
  0x4e   :  { %v265_v20 = vadd.s32 4294967294, %v211_v15 }
  0x4f   :  { %v114_v18 = vor.u32 %v113_v9, %v112_v6  ;;  %v117_v19 = vshll.u32 %v116_v13, 23 }
  0x50   :  { %vm266_vm13 = vcmp.lt.s32.totalorder %v265_v20, 0 }
  0x51   :  { %v118_v21 = vor.u32 4788187, %v117_v19  ;;  %v121_v22 = vcvt.s32.f32 %v114_v18  ;;  %v214_v17 = vsel %vm266_vm13, 0, %v265_v20 }
  0x52   :  { %v215_v25 = vsub.s32 32, %v214_v17  ;;  %v216_v26 = vshll.u32 %v207_v2, %v214_v17  ;;  %v219_v27 = vsub.s32 4294967266, %v214_v17 }
  0x53   :  { %v119_v24 = vand.u32 2147483647, %v118_v21 }
  0x54   :  { %v217_v29 = vshrl.u32 %v199_v23, %v215_v25  ;;  %v220_v33 = vadd.s32 127, %v219_v27 }
  0x55   :  { %v122_v28 = vmul.f32 %v121_v22, %v119_v24 }
  0x56   :  { %v218_v31 = vor.u32 %v217_v29, %v216_v26  ;;  %v221_v36 = vshll.u32 %v220_v33, 23 }
  0x57   :  { %v123_v34 = vxor.u32 2147483648, %v122_v28 }
  0x58   :  { %v222_v39 = vor.u32 4788187, %v221_v36  ;;  %v225_v40 = vcvt.s32.f32 %v218_v31 }
  0x59   :  { %v124_v30 = vsel %vm41_vm14, %v123_v34, %v122_v28 }
  0x5a   :  { %v127_v37 = vsel %vm40_vm15, %v335_v10, %v124_v30  ;;  %v223_v41 = vand.u32 2147483647, %v222_v39 }
  0x5b   :  { %282 = vcosq.f32 %v127_v37 }
  0x5c   :  { %284 = vsinq.f32 %v127_v37  ;;  %v226_v45 = vmul.f32 %v225_v40, %v223_v41 }
  0x5e   :  { %v227_v12 = vxor.u32 2147483648, %v226_v45 }
  0x60   :  { %v228_v48 = vsel %vm145_vm0, %v227_v12, %v226_v45 }
  0x61   :  { %v231_v49 = vsel %vm144_vm1, %v337_v11, %v228_v48 }
  0x62   :  { %286 = vcosq.f32 %v231_v49 }
  0x63   :  { %288 = vsinq.f32 %v231_v49 }
  0x65   :  { %v283_v51 = vpop.eup %282 }
  0x66   :  { %v285_v52 = vpop.eup %284  ;;  %v139_v53 = vxor.u32 2147483648, %v283_v51 }
  0x67   :  { %v136_v14 = vxor.u32 2147483648, %v285_v52 }
  0x68   :  { %v140_v55 = vsel %vm138_vm2, %v139_v53, %v285_v52 }
  0x69   :  { %v137_v56 = vsel %vm135_vm3, %v283_v51, %v136_v14 }
  0x6a   :  { %v141_v44 = vsel %vm134_vm4, %v137_v56, %v140_v55 }
  0x6b   :  { %v142_v59 = vsel %vm131_vm5, nan, %v141_v44 }
  0x6c   :  { %v248_v60 = vmul.f32 %v247_v57, %v142_v59  ;;  %v287_v61 = vpop.eup %286 }
  0x6d   :  { %v289_v62 = vpop.eup %288  ;;  %v243_v63 = vxor.u32 2147483648, %v287_v61 }
  0x6e   :  { %250 = vst [vmem:[%s416_s2] sm:$0xff] %v248_v60  ;;  %v240_v0 = vxor.u32 2147483648, %v289_v62 }
  0x6f   :  { %v244_v10 = vsel %vm242_vm6, %v243_v63, %v289_v62 }
  0x70   :  { %v241_v1 = vsel %vm239_vm7, %v287_v61, %v240_v0 }
  0x71   :  { %v245_v2 = vsel %vm238_vm8, %v241_v1, %v244_v10 }
  0x72   :  { %v246_v3 = vsel %vm235_vm9, nan, %v245_v2 }
  0x73   :  { %v249_v32 = vmul.f32 %v247_v57, %v246_v3 }
  0x75   :  { %251 = vst [vmem:[%s416_s2 + $0x8] sm:$0xff] %v249_v32 }
  0x76   :  { %256 = vsyncpa [#allocation3], 1 }

</bundles_post_ra>
